<compile_context>
chip_gen: v7x
topology: tpu7x:2x2x1
jax: 0.10.0
libtpu: 0.0.40
codegen_flags: <defaults>
</compile_context>

<pallas_src>
import math
import functools

import jax
import jax.numpy as jnp
from jax import lax
from jax.experimental import pallas as pl
from jax.experimental.pallas import tpu as pltpu


def get_embedding(num_embeddings: int, embed_dim: int, padding_idx=None):
    """JAX port of PositionalEmbedding.get_embedding (used only by the reference)."""
    half_dim = embed_dim // 2
    scale = math.log(10000.0) / max(half_dim - 1, 1)   # guard fairseq div-by-zero
    inv_freq = jnp.exp(jnp.arange(half_dim, dtype=jnp.float32) * -scale)
    args = jnp.arange(num_embeddings, dtype=jnp.float32)[:, None] * inv_freq[None, :]
    emb = jnp.concatenate([jnp.sin(args), jnp.cos(args)], axis=1).reshape(
        num_embeddings, -1
    )
    if embed_dim % 2 == 1:
        emb = jnp.concatenate(
            [emb, jnp.zeros((num_embeddings, 1), jnp.float32)], axis=1
        )
    if padding_idx is not None:
        emb = emb.at[padding_idx, :].set(0.0)
    return emb


def _make_freq_phase(embed_dim: int) -> jax.Array:
    """(2, E) table: row 0 = per-column frequency, row 1 = per-column phase.

    Column layout matches fairseq: [sin(f0..f_{h-1}) | cos(f0..f_{h-1}) | (0 if odd)].
    cos is expressed as sin(x + pi/2); the odd trailing column gets freq=phase=0
    so sin(0) = 0 reproduces the zero-padded table column.
    """
    half = embed_dim // 2
    scale = math.log(10000.0) / max(half - 1, 1)
    idx = jnp.arange(embed_dim, dtype=jnp.int32)
    kf = jnp.where(idx < half, idx, idx - half).astype(jnp.float32)
    inv_freq = jnp.exp(kf * (-scale))
    phase = jnp.where(idx < half, 0.0, math.pi / 2.0).astype(jnp.float32)
    if embed_dim % 2 == 1:
        last = idx == (embed_dim - 1)
        inv_freq = jnp.where(last, 0.0, inv_freq)
        phase = jnp.where(last, 0.0, phase)
    return jnp.stack([inv_freq, phase], axis=0)        # (2, E) float32


def _pos_embed_kernel(ids_ref, tri_ref, fp_ref, out_ref, carry_ref, *, padding_idx: int):
    s_idx = pl.program_id(1)

    # Reset the per-row mask-count carry at the start of each batch tile's seq sweep
    # (seq is the innermost, "arbitrary" grid axis).
    @pl.when(s_idx == 0)
    def _():
        carry_ref[...] = jnp.zeros_like(carry_ref)

    ids = ids_ref[...]                                   # (tb, ts) int32
    E = out_ref.shape[-1]

    # mask = inputs.ne(padding_idx)
    maskf = (ids != padding_idx).astype(jnp.float32)     # (tb, ts)

    # Within-tile inclusive cumsum as an upper-triangular matmul against the cached
    # (ts, ts) bf16 table (exact for 0/1 values; MXU accumulates in f32).
    csum = jnp.dot(maskf.astype(jnp.bfloat16), tri_ref[...],
                   preferred_element_type=jnp.float32)   # (tb, ts)

    # Add the carried mask count from previous seq tiles, then update the carry.
    carry = carry_ref[...]                               # (tb, 1)
    csum = csum + carry
    carry_ref[...] = carry + jnp.sum(maskf, axis=1, keepdims=True)

    # positions = cumsum(mask) * mask + padding_idx   (small ints, exact in f32)
    pos_f = csum * maskf + jnp.float32(padding_idx)      # (tb, ts)

    # Analytic sinusoidal embedding with cached freq/phase: one sin per element
    # (cos folded in as a +pi/2 phase, odd-E zero column via freq=phase=0).
    fp = fp_ref[...]                                     # (2, E) f32
    freq = fp[0:1, :].reshape(1, 1, E)
    phase = fp[1:2, :].reshape(1, 1, E)
    args = pos_f[:, :, None] * freq + phase              # (tb, ts, E)
    emb = jnp.sin(args)                                  # single EUP op per element

    # Padding tokens gather the zeroed weights[padding_idx] row -> multiply by mask.
    out_ref[...] = (emb * maskf[:, :, None]).astype(out_ref.dtype)


def _block_vmem_bytes(tb: int, ts: int, E: int, out_bytes: int) -> int:
    out_blk = tb * ts * E * out_bytes * 2     # double-buffered output block
    ids_blk = tb * ts * 4 * 2                 # double-buffered ids block
    tri_blk = ts * ts * 2 * 2                 # bf16 tri table (double-buffered)
    temps = tb * ts * E * 4 * 2               # in-kernel f32 temporaries (args/emb)
    return out_blk + ids_blk + tri_blk + temps


def _pick_tiles(B: int, S: int, E: int, out_bytes: int,
                budget_bytes: int = 12 * 1024 * 1024):
    """Largest legal (tb, ts) under a VMEM budget; prefer >=2 batch blocks (megacore)."""
    if S % 128 == 0:
        ts_cands = sorted({c for c in range(128, S + 1, 128) if S % c == 0},
                          reverse=True)
    else:
        ts_cands = [S]                        # full seq extent (always legal)
    if B % 8 == 0:
        tb_cands = sorted({c for c in range(8, B + 1, 8) if B % c == 0},
                          reverse=True)
    else:
        tb_cands = [B]                        # full batch extent (always legal)

    def fits(tb, ts):
        return _block_vmem_bytes(tb, ts, E, out_bytes) <= budget_bytes

    # Pass 1: prefer tilings that give >=2 blocks on the parallel batch axis (v7x).
    for tb in tb_cands:
        if B // tb < 2:
            continue
        for ts in ts_cands:
            if fits(tb, ts):
                return tb, ts
    # Pass 2: any tiling that fits the budget.
    for tb in tb_cands:
        for ts in ts_cands:
            if fits(tb, ts):
                return tb, ts
    # Pass 3: smallest legal tiling (still bounded by vmem_limit_bytes at compile).
    return tb_cands[-1], ts_cands[-1]


def positional_embedding(inputs: jax.Array, embed_dim: int, padding_idx: int,
                         *, out_dtype=jnp.float32):
    """Forward pass of PositionalEmbedding (non-incremental branch)."""
    B, S = inputs.shape
    out_bytes = jnp.dtype(out_dtype).itemsize
    tb, ts = _pick_tiles(B, S, embed_dim, out_bytes)
    grid = (B // tb, S // ts)

    # Cached per-step constants (constant index_map -> resident in VMEM, no re-DMA).
    ar = jnp.arange(ts, dtype=jnp.int32)
    tri = (ar[:, None] <= ar[None, :]).astype(jnp.bfloat16)       # (ts, ts)
    freq_phase = _make_freq_phase(embed_dim)                      # (2, E)

    kernel = functools.partial(_pos_embed_kernel, padding_idx=padding_idx)
    out = pl.pallas_call(
        kernel,
        out_shape=jax.ShapeDtypeStruct((B, S, embed_dim), out_dtype),
        grid_spec=pltpu.PrefetchScalarGridSpec(
            num_scalar_prefetch=0,
            grid=grid,
            in_specs=[
                pl.BlockSpec((tb, ts), lambda b, s: (b, s)),
                pl.BlockSpec((ts, ts), lambda b, s: (0, 0)),          # tri (constant)
                pl.BlockSpec((2, embed_dim), lambda b, s: (0, 0)),    # freq/phase
            ],
            out_specs=pl.BlockSpec((tb, ts, embed_dim), lambda b, s: (b, s, 0)),
            scratch_shapes=[pltpu.VMEM((tb, 1), jnp.float32)],  # seq-carry of mask counts
        ),
        compiler_params=pltpu.CompilerParams(
            dimension_semantics=("parallel", "arbitrary"),
            vmem_limit_bytes=32 * 1024 * 1024,
        ),
    )(inputs.astype(jnp.int32), tri, freq_phase)
    return out


def _reference(inputs: jax.Array, embed_dim: int, padding_idx: int):
    """Pure-JAX reference mirroring the PyTorch forward."""
    B, S = inputs.shape
    w = get_embedding(padding_idx + 1 + S, embed_dim, padding_idx)
    mask = (inputs != padding_idx).astype(jnp.int32)
    positions = jnp.cumsum(mask, axis=1) * mask + padding_idx
    return w[positions.reshape(-1)].reshape(B, S, -1)


if __name__ == "__main__":
    key = jax.random.PRNGKey(0)

    # Tolerances: the cos-as-sin(x + pi/2) phase trick perturbs the argument by
    # ~0.5 ulp(|args|) (<~7e-5 for positions up to ~1k), hence 2e-4 atol.
    ATOL, RTOL = 2e-4, 2e-4

    # Small test matching the module's toy shapes.
    embed_dim, padding_idx = 32, 1
    batch, seq = 2, 8
    inputs = jax.random.randint(key, (batch, seq), minval=0, maxval=10, dtype=jnp.int32)
    out = jax.block_until_ready(positional_embedding(inputs, embed_dim, padding_idx))
    ref = _reference(inputs, embed_dim, padding_idx)
    assert out.shape == (batch, seq, embed_dim)
    assert out.dtype == jnp.float32
    assert jnp.allclose(out, ref, atol=ATOL, rtol=RTOL)

    # Larger test exercising the seq grid and the cross-tile cumsum carry.
    embed_dim2, padding_idx2 = 64, 1
    batch2, seq2 = 4, 1024
    key2 = jax.random.PRNGKey(1)
    inputs2 = jax.random.randint(key2, (batch2, seq2), minval=0, maxval=5, dtype=jnp.int32)
    out2 = jax.block_until_ready(positional_embedding(inputs2, embed_dim2, padding_idx2))
    ref2 = _reference(inputs2, embed_dim2, padding_idx2)
    assert out2.shape == (batch2, seq2, embed_dim2)
    assert jnp.allclose(out2, ref2, atol=ATOL, rtol=RTOL)

    print("KERNEL_OK")
</pallas_src>

<mosaic_0001>
module attributes {stable_mosaic.version = 11 : i64} {
  func.func @_pos_embed_kernel(%arg0: i32, %arg1: i32, %arg2: memref<2x8xi32, #tpu.memory_space<vmem>>, %arg3: memref<8x8xbf16, #tpu.memory_space<vmem>>, %arg4: memref<2x32xf32, #tpu.memory_space<vmem>>, %arg5: memref<2x8x32xf32, #tpu.memory_space<vmem>>, %arg6: memref<2x1xf32, #tpu.memory_space<vmem>>) attributes {dimension_semantics = [#tpu.dimension_semantics<parallel>, #tpu.dimension_semantics<arbitrary>], iteration_bounds = array<i64: 1, 1>, scalar_prefetch = 0 : i64, scratch_operands = 1 : i64, tpu.core_type = #tpu.core_type<tc>, window_params = [{transform_indices = @transform_0, window_bounds = array<i64: 2, 8>}, {pipeline_mode = #tpu.pipeline_mode<synchronous>, transform_indices = @transform_1, window_bounds = array<i64: 8, 8>}, {pipeline_mode = #tpu.pipeline_mode<synchronous>, transform_indices = @transform_2, window_bounds = array<i64: 2, 32>}, {transform_indices = @transform_3, window_bounds = array<i64: 2, 8, 32>}]} {
    %c0_i32 = arith.constant 0 : i32
    %0 = arith.cmpi eq, %arg1, %c0_i32 : i32
    %1 = arith.extui %0 : i1 to i32
    %c0_i32_0 = arith.constant 0 : i32
    %2 = arith.cmpi ne, %1, %c0_i32_0 : i32
    scf.if %2 {
      %cst_15 = arith.constant 0.000000e+00 : f32
      %37 = vector.broadcast %cst_15 : f32 to vector<2x1xf32>
      %c0_16 = arith.constant 0 : index
      %c0_17 = arith.constant 0 : index
      %38 = vector.load %arg6[%c0_16, %c0_17] : memref<2x1xf32, #tpu.memory_space<vmem>>, vector<2x1xf32>
      tpu.vector_store %arg6[%c0_16, %c0_17], %37 {strides = array<i32>} : memref<2x1xf32, #tpu.memory_space<vmem>>, vector<2x1xf32>,
    } else {
    }
    %c0 = arith.constant 0 : index
    %c0_1 = arith.constant 0 : index
    %3 = vector.load %arg2[%c0, %c0_1] : memref<2x8xi32, #tpu.memory_space<vmem>>, vector<2x8xi32>
    %c1_i32 = arith.constant 1 : i32
    %4 = vector.broadcast %c1_i32 : i32 to vector<2x8xi32>
    %5 = arith.cmpi ne, %3, %4 : vector<2x8xi32>
    %6 = arith.extui %5 : vector<2x8xi1> to vector<2x8xi32>
    %7 = arith.sitofp %6 : vector<2x8xi32> to vector<2x8xf32>
    %8 = arith.truncf %7 : vector<2x8xf32> to vector<2x8xbf16>
    %c0_2 = arith.constant 0 : index
    %c0_3 = arith.constant 0 : index
    %9 = vector.load %arg3[%c0_2, %c0_3] : memref<8x8xbf16, #tpu.memory_space<vmem>>, vector<8x8xbf16>
    %cst = arith.constant dense<0.000000e+00> : vector<2x8xf32>
    %10 = tpu.matmul %8, %9, %cst {dimension_numbers = #tpu.dot_dimension_numbers<[1], [0], [0], [1], [0, 0, 1, 1], [], []>} : vector<2x8xbf16>, vector<8x8xbf16>, vector<2x8xf32> -> vector<2x8xf32>
    %c0_4 = arith.constant 0 : index
    %c0_5 = arith.constant 0 : index
    %11 = vector.load %arg6[%c0_4, %c0_5] : memref<2x1xf32, #tpu.memory_space<vmem>>, vector<2x1xf32>
    %12 = vector.broadcast %11 : vector<2x1xf32> to vector<2x8xf32>
    %13 = arith.addf %10, %12 : vector<2x8xf32>
    %cst_6 = arith.constant dense<0.000000e+00> : vector<2xf32>
    %14 = vector.multi_reduction <add>, %7, %cst_6 [1] : vector<2x8xf32> to vector<2xf32>
    %15 = vector.shape_cast %14 : vector<2xf32> to vector<2x1xf32>
    %16 = arith.addf %11, %15 : vector<2x1xf32>
    %c0_7 = arith.constant 0 : index
    %c0_8 = arith.constant 0 : index
    %17 = vector.load %arg6[%c0_7, %c0_8] : memref<2x1xf32, #tpu.memory_space<vmem>>, vector<2x1xf32>
    tpu.vector_store %arg6[%c0_7, %c0_8], %16 {strides = array<i32>} : memref<2x1xf32, #tpu.memory_space<vmem>>, vector<2x1xf32>,
    %18 = arith.mulf %13, %7 : vector<2x8xf32>
    %cst_9 = arith.constant 1.000000e+00 : f32
    %19 = vector.broadcast %cst_9 : f32 to vector<2x8xf32>
    %20 = arith.addf %18, %19 : vector<2x8xf32>
    %c0_10 = arith.constant 0 : index
    %c0_11 = arith.constant 0 : index
    %21 = vector.load %arg4[%c0_10, %c0_11] : memref<2x32xf32, #tpu.memory_space<vmem>>, vector<2x32xf32>
    %22 = vector.extract_strided_slice %21 {offsets = [0, 0], sizes = [1, 32], strides = [1, 1]} : vector<2x32xf32> to vector<1x32xf32>
    %23 = vector.shape_cast %22 : vector<1x32xf32> to vector<1x1x32xf32>
    %24 = vector.extract_strided_slice %21 {offsets = [1, 0], sizes = [1, 32], strides = [1, 1]} : vector<2x32xf32> to vector<1x32xf32>
    %25 = vector.shape_cast %24 : vector<1x32xf32> to vector<1x1x32xf32>
    %26 = vector.shape_cast %20 : vector<2x8xf32> to vector<2x8x1xf32>
    %27 = vector.broadcast %26 : vector<2x8x1xf32> to vector<2x8x32xf32>
    %28 = vector.broadcast %23 : vector<1x1x32xf32> to vector<2x8x32xf32>
    %29 = arith.mulf %27, %28 : vector<2x8x32xf32>
    %30 = vector.broadcast %25 : vector<1x1x32xf32> to vector<2x8x32xf32>
    %31 = arith.addf %29, %30 : vector<2x8x32xf32>
    %32 = math.sin %31 : vector<2x8x32xf32>
    %33 = vector.shape_cast %7 : vector<2x8xf32> to vector<2x8x1xf32>
    %34 = vector.broadcast %33 : vector<2x8x1xf32> to vector<2x8x32xf32>
    %35 = arith.mulf %32, %34 : vector<2x8x32xf32>
    %c0_12 = arith.constant 0 : index
    %c0_13 = arith.constant 0 : index
    %c0_14 = arith.constant 0 : index
    %36 = vector.load %arg5[%c0_12, %c0_13, %c0_14] : memref<2x8x32xf32, #tpu.memory_space<vmem>>, vector<2x8x32xf32>
    tpu.vector_store %arg5[%c0_12, %c0_13, %c0_14], %35 {strides = array<i32>} : memref<2x8x32xf32, #tpu.memory_space<vmem>>, vector<2x8x32xf32>,
    return
  }
  func.func @transform_0(%arg0: i32, %arg1: i32) -> (i32, i32) {
    %c0_i32 = arith.constant 0 : i32
    return %arg0, %arg1 : i32, i32
  }
  func.func @transform_1(%arg0: i32, %arg1: i32) -> (i32, i32) {
    %c0_i32 = arith.constant 0 : i32
    %c0_i32_0 = arith.constant 0 : i32
    %c0_i32_1 = arith.constant 0 : i32
    return %c0_i32, %c0_i32_0 : i32, i32
  }
  func.func @transform_2(%arg0: i32, %arg1: i32) -> (i32, i32) {
    %c0_i32 = arith.constant 0 : i32
    %c0_i32_0 = arith.constant 0 : i32
    %c0_i32_1 = arith.constant 0 : i32
    return %c0_i32, %c0_i32_0 : i32, i32
  }
  func.func @transform_3(%arg0: i32, %arg1: i32) -> (i32, i32, i32) {
    %c0_i32 = arith.constant 0 : i32
    %c0_i32_0 = arith.constant 0 : i32
    return %arg0, %arg1, %c0_i32 : i32, i32, i32
  }
}

</mosaic_0001>

<bundles_post_ra>
// kernel: tpu_custom_call.1
= control target key start
LH: loop header
LB: loop body
LE: loop exit
PB: predicated region body
PF: predicated region fallthrough
CT: control target
= control target key end

     0   :  { %8 = vsyncpa [#allocation4], 0  ;;  %s670_s0 = inlined_call_operand.hbm [shape: s32[2,8], index: 0, kind: input, shape index: {}]   ;;  %s671_s1 = inlined_call_operand.hbm [shape: bf16[8,8], index: 1, kind: input, shape index: {}]   ;;  %s672_s2 = inlined_call_operand.vmem [shape: f32[2,32], index: 2, kind: input, shape index: {}]   ;;  %s673_s3 = inlined_call_operand.hbm [shape: f32[2,8,32], index: 3, kind: output, shape index: {}]  }
   0x1   :  { %9 = vsyncpa [#allocation7], 0 }
   0x2   :  { %10 = vsyncpa [#allocation5], 0  ;;  %s508_s12 = smov [#allocation3]   ;;  %s509_s14 = smov [#allocation6]  }
   0x3   :  { %s17_s13 = sshll.u32 %s508_s12, 4  ;;  %s27_s15 = sshll.u32 %s509_s14, 4  ;;  %s18_s13 = int_to_ptr.vmem [resolvable:$true] %s17_s13  ;;  %s28_s15 = int_to_ptr.vmem [resolvable:$true] %s27_s15 }
   0x4   :  { %s436_s18 = scalar_lea.hbm %s670_s0, 32 }
   0x5   :  { %p437_p0 = scmp.ne.s32.totalorder %s670_s0, %s436_s18  ;;  %p440_p1 = scmp.lt.u32.totalorder %s436_s18, %s670_s0 }
   0x7   :  { %p442_p2 = pnand %p440_p1, %p437_p0 }
   0x9   :  { %445 = shalt.err (!%p442_p2)
}
   0xa   :  { %s446_s23 = scalar_lea.vmem %s18_s13, 32  ;;  %p451_p4 = scmp.lt.s32.totalorder %s18_s13, %s18_s13 }
   0xb   :  { %p447_p3 = scmp.ne.s32.totalorder %s18_s13, %s446_s23  ;;  %p452_p5 = scmp.lt.s32.totalorder %s446_s23, %s446_s23 }
   0xd   :  { %p453_p6 = por %p452_p5, %p451_p4 }
   0xf   :  { %p454_p7 = pnand %p453_p6, %p447_p3 }
  0x11   :  { %457 = shalt.err (!%p454_p7)
}
  0x12   :  { %20 = dma.hbm_to_vmem [thread:$0]  %s670_s0, 32, %s18_s13, [#allocation4]  }
  0x13   :  { %s458_s28 = scalar_lea.hbm %s671_s1, 64 }
  0x14   :  { %p459_p8 = scmp.ne.s32.totalorder %s671_s1, %s458_s28  ;;  %p462_p9 = scmp.lt.u32.totalorder %s458_s28, %s671_s1 }
  0x16   :  { %p464_p10 = pnand %p462_p9, %p459_p8 }
  0x18   :  { %467 = shalt.err (!%p464_p10)
}
  0x19   :  { %s468_s6 = scalar_lea.vmem %s28_s15, 64  ;;  %p473_p12 = scmp.lt.s32.totalorder %s28_s15, %s28_s15 }
  0x1a   :  { %p469_p11 = scmp.ne.s32.totalorder %s28_s15, %s468_s6  ;;  %p474_p13 = scmp.lt.s32.totalorder %s468_s6, %s468_s6 }
  0x1c   :  { %p475_p0 = por %p474_p13, %p473_p12 }
  0x1e   :  { %p476_p1 = pnand %p475_p0, %p469_p11 }
  0x20   :  { %479 = shalt.err (!%p476_p1)
}
  0x21   :  { %30 = dma.hbm_to_vmem [thread:$0]  %s671_s1, 64, %s28_s15, [#allocation7]  }
  0x22   :  { %502 = dma.done.wait [#allocation4], 32  }
  0x23   :  { %503 = vsyncadd [#allocation4], 4294967264 }
  0x24   :  { %504 = dma.done.wait [#allocation7], 64  }
  0x25   :  { %505 = vsyncadd [#allocation7], 4294967232  ;;  %vm44_vm0 = vcmask 1024   ;;  %v510_v0 = vmov 0.0   ;;  %vm511_vm1 = vmmov 0   ;;  %v512_v1 = vmov 0  }
  0x26   :  { %45 = vst.msk [vmem:[#allocation2] sm:$0x3] %vm44_vm0, %v510_v0  ;;  %399 = vmatprep.subr.bf16.mxu0 %v510_v0  ;;  %401 = vmatprep.mubr.msk.bf16.mxu0 %vm511_vm1, %v510_v0  ;;  %vm62_vm2 = vcmask 1043456   ;;  %v46_v2 = vld [vmem:[#allocation3] sm:$0x3]  ;;  %vm58_vm4 = vcmask 64512   ;;  %v116_v8 = vlaneseq }
  0x27   :  { %427 = vset.pattern.permute.xlu0 %v512_v1  ;;  %v51_v3 = vld [vmem:[#allocation6] sm:$0xf]  ;;  %vm47_vm3 = vcmp.ne.s32.totalorder %v46_v2, 1  ;;  %vm106_vm5 = vcmask 58368   ;;  %v115_v25 = vld [vmem:[%s672_s2] sm:$0x3] }
  0x28   :  { %v64_v4 = vsel %vm62_vm2, %v51_v3, 0  ;;  %v387_v6 = vsel %vm47_vm3, 1.0, %v510_v0  ;;  %v117_v10 = vshrl.u32 %v116_v8, 7  ;;  %v513_v55 = vmov 2102212464   ;;  %s519_s2 = smov [#allocation8]  }
  0x29   :  { %400 = vmatpush3.bf16.msra.mxu0 %v64_v4  ;;  %v50_v7 = vpack.c.bf16 %v387_v6, %v387_v6  ;;  %v107_v24 = vsel %vm106_vm5, %v387_v6, 0.0  ;;  %v514_v57 = vmov 920167782   ;;  %v515_v62 = vmov 1326507024   ;;  %s374_s9 = sshll.u32 %s519_s2, 4  ;;  %s375_s9 = int_to_ptr.vmem [resolvable:$true] %s374_s9 }
  0x2a   :  { %v125_v17 = vsub.s32 1, %v117_v10  ;;  %v118_v18 = vsub.s32 0, %v117_v10  ;;  %v516_v4 = vmov 683565275   ;;  %v518_v10 = vmov 2131351028   ;;  %p485_p3 = scmp.lt.s32.totalorder %s375_s9, %s375_s9 }
  0x2b   :  { %s480_s10 = scalar_lea.vmem %s375_s9, 256 }
  0x2c   :  { %402 = vmatmul.mubr.msk.bf16.vlgmr.msra.gmra.mrb[0].mxu0 %vm58_vm4, %v50_v7  ;;  %v353_v22 = vrot.slane %v387_v6, %v118_v18  ;;  %v360_v23 = vrot.slane %v387_v6, %v125_v17  ;;  %v133_v26 = vrot.slane %v115_v25, %v118_v18  ;;  %v139_v27 = vrot.slane %v115_v25, %v125_v17  ;;  %p481_p2 = scmp.ne.s32.totalorder %s375_s9, %s480_s10  ;;  %p486_p4 = scmp.lt.s32.totalorder %s480_s10, %s480_s10 }
  0x2d   :  { %v567_v5 = vld [vmem:[#allocation2] sm:$0x3]  ;;  %v517_v7 = vmov 2475754826  }
  0x2e   :  { %55 = vperm.xlu0 %427, %v567_v5   ;;  %p487_p5 = por %p486_p4, %p485_p3 }
  0x30   :  { %p488_p6 = pnand %p487_p5, %p481_p2 }
  0xad   :  { %v56_v9 = vpop.permute.xlu0 %55 }
  0xff   :  { %v100_v11 = vpop.f32.mrb[0].mxu0 }
 0x100   :  { %v101_v12 = vadd.f32 %v100_v11, %v56_v9  ;;  %v403_v13 = vpop.f32.mrb[1].mxu0 }
 0x101   :  { %v103_v14 = vpop.f32.mrb[2].mxu0 }
 0x102   :  { %v404_v15 = vpop.f32.mrb[3].mxu0  ;;  %v113_v16 = vmul.f32 %v387_v6, %v101_v12 }
 0x104   :  { %v114_v19 = vadd.f32 1.0, %v113_v16 }
 0x106   :  { %v126_v20 = vrot.slane %v114_v19, %v125_v17  ;;  %v119_v21 = vrot.slane %v114_v19, %v118_v18 }
 0x108   :  { %128 = vbcast.lane.b32.xlu1 %v126_v20, 256  ;;  %121 = vbcast.lane.b32.xlu0 %v119_v21, 256 }
 0x10c   :  { %355 = vbcast.lane.b32.xlu0 %v353_v22, 256 }
 0x110   :  { %362 = vbcast.lane.b32.xlu0 %v360_v23, 256 }
 0x12c   :  { %108 = vadd.xlane.f32.xlu1 %v107_v24 }
 0x17a   :  { %v129_v28 = vpop.permute.xlu1 %128  ;;  %v122_v29 = vpop.permute.xlu0 %121 }
 0x17b   :  { %v135_v30 = vmul.f32 %v133_v26, %v129_v28  ;;  %v134_v31 = vmul.f32 %v133_v26, %v122_v29 }
 0x17d   :  { %v573_v32 = vadd.f32 %v139_v27, %v135_v30  ;;  %v575_v33 = vadd.f32 %v139_v27, %v134_v31 }
 0x17f   :  { %v249_v34 = vand.u32 2139095040, %v573_v32  ;;  %v145_v35 = vand.u32 2139095040, %v575_v33  ;;  %v142_v36 = vand.u32 2147483647, %v575_v33  ;;  %v246_v41 = vand.u32 2147483647, %v573_v32 }
 0x180   :  { %vm144_vm5 = vcmp.lt.s32.totalorder %v575_v33, 0 }
 0x181   :  { %v250_v37 = vshrl.u32 %v249_v34, 23  ;;  %v146_v38 = vshrl.u32 %v145_v35, 23  ;;  %v149_v42 = vand.u32 8388607, %v142_v36  ;;  %v585_v45 = vand.u32 8388607, %v246_v41 }
 0x183   :  { %v393_v39 = vadd.s32 4294967169, %v250_v37  ;;  %v389_v40 = vadd.s32 4294967169, %v146_v38  ;;  %v150_v48 = vor.u32 8388608, %v149_v42  ;;  %v254_v54 = vor.u32 8388608, %v585_v45 }
 0x185   :  { %v256_v43 = vadd.s32 1, %v393_v39  ;;  %v152_v44 = vadd.s32 1, %v389_v40  ;;  %v592_v60 = vshll.u32 %v150_v48, 8 }
 0x187   :  { %vm257_vm6 = vcmp.gt.s32.totalorder %v256_v43, 0  ;;  %vm153_vm7 = vcmp.gt.s32.totalorder %v152_v44, 0 }
 0x188   :  { %v258_v46 = vsel %vm257_vm6, %v256_v43, 0  ;;  %v154_v47 = vsel %vm153_vm7, %v152_v44, 0  ;;  %vm143_vm6 = vcmp.le.f32.partialorder %v142_v36, 0.7853982  ;;  %vm247_vm7 = vcmp.le.f32.partialorder %v246_v41, 0.7853982 }
 0x189   :  { %v260_v49 = vand.u32 31, %v258_v46  ;;  %v156_v50 = vand.u32 31, %v154_v47  ;;  %v587_v51 = vshrl.u32 %v258_v46, 5  ;;  %v155_v53 = vshrl.u32 %v154_v47, 5 }
 0x18b   :  { %v589_v52 = vsub.s32 32, %v260_v49  ;;  %v272_v56 = vshll.u32 %v513_v55, %v260_v49  ;;  %v275_v58 = vshll.u32 %v514_v57, %v260_v49  ;;  %v157_v59 = vsub.s32 32, %v156_v50 }
 0x18c   :  { %v168_v0 = vshll.u32 %v513_v55, %v156_v50  ;;  %v171_v1 = vshll.u32 %v514_v57, %v156_v50  ;;  %vm281_vm8 = vcmp.lt.s32.totalorder %v587_v51, 4  ;;  %v159_v6 = vshll.u32 %v516_v4, %v156_v50 }
 0x18d   :  { %v273_v61 = vshrl.u32 %v514_v57, %v589_v52  ;;  %v276_v63 = vshrl.u32 %v515_v62, %v589_v52  ;;  %v169_v2 = vshrl.u32 %v514_v57, %v157_v59  ;;  %v172_v3 = vshrl.u32 %v515_v62, %v157_v59 }
 0x18e   :  { %v160_v8 = vshrl.u32 %v517_v7, %v157_v59  ;;  %vm177_vm9 = vcmp.lt.s32.totalorder %v155_v53, 4  ;;  %v162_v9 = vshll.u32 %v517_v7, %v156_v50  ;;  %v163_v11 = vshrl.u32 %v518_v10, %v157_v59 }
 0x18f   :  { %v165_v12 = vshll.u32 %v518_v10, %v156_v50  ;;  %v170_v13 = vor.u32 %v169_v2, %v168_v0  ;;  %v173_v14 = vor.u32 %v172_v3, %v171_v1  ;;  %v166_v16 = vshrl.u32 %v513_v55, %v157_v59 }
 0x190   :  { %v161_v15 = vor.u32 %v160_v8, %v159_v6  ;;  %v274_v17 = vor.u32 %v273_v61, %v272_v56  ;;  %v277_v18 = vor.u32 %v276_v63, %v275_v58  ;;  %v158_v19 = vshrl.u32 %v516_v4, %v157_v59 }
 0x191   :  { %v164_v20 = vor.u32 %v163_v11, %v162_v9  ;;  %v183_v21 = vsel %vm177_vm9, %v170_v13, 920167782  ;;  %v187_v22 = vsel %vm177_vm9, %v173_v14, 1326507024  ;;  %v167_v23 = vor.u32 %v166_v16, %v165_v12 }
 0x192   :  { %vm174_vm10 = vcmp.lt.s32.totalorder %v155_v53, 1  ;;  %vm175_vm11 = vcmp.lt.s32.totalorder %v155_v53, 2  ;;  %vm176_vm12 = vcmp.lt.s32.totalorder %v155_v53, 3  ;;  %v263_v35 = vshll.u32 %v516_v4, %v260_v49 }
 0x193   :  { %v178_v24 = vsel %vm174_vm10, %v158_v19, %v161_v15  ;;  %v182_v25 = vsel %vm174_vm10, %v161_v15, %v164_v20  ;;  %v179_v26 = vsel %vm177_vm9, %v167_v23, 2102212464  ;;  %v184_v27 = vsel %vm176_vm12, %v167_v23, %v183_v21 }
 0x194   :  { %v186_v28 = vsel %vm174_vm10, %v164_v20, %v167_v23  ;;  %v188_v29 = vsel %vm176_vm12, %v170_v13, %v187_v22  ;;  %v180_v30 = vsel %vm176_vm12, %v164_v20, %v179_v26  ;;  %v185_v31 = vsel %vm175_vm11, %v182_v25, %v184_v27 }
 0x195   :  { %v189_v34 = vsel %vm175_vm11, %v186_v28, %v188_v29  ;;  %v181_v37 = vsel %vm175_vm11, %v178_v24, %v180_v30  ;;  %v264_v40 = vshrl.u32 %v517_v7, %v589_v52  ;;  %v291_v42 = vsel %vm281_vm8, %v277_v18, 1326507024 }
 0x196   :  { %v601_v38 = vmul.u32.u64.low %v592_v60, %v189_v34  ;;  %v602_v39 = vmul.u32.u64.high %v592_v60, %v189_v34, %v601_v38  ;;  %v608_v43 = vmul.u32.u64.low %v592_v60, %v185_v31  ;;  %v609_v44 = vmul.u32.u64.high %v592_v60, %v185_v31, %v608_v43 }
 0x197   :  { %v266_v46 = vshll.u32 %v517_v7, %v260_v49  ;;  %v265_v47 = vor.u32 %v264_v40, %v263_v35  ;;  %v267_v48 = vshrl.u32 %v518_v10, %v589_v52  ;;  %v269_v50 = vshll.u32 %v518_v10, %v260_v49 }
 0x198   :  { %v270_v53 = vshrl.u32 %v513_v55, %v589_v52  ;;  %v287_v56 = vsel %vm281_vm8, %v274_v17, 920167782  ;;  %v197_v57 = vmul.u32 %v592_v60, %v181_v37  ;;  %v262_v58 = vshrl.u32 %v516_v4, %v589_v52 }
 0x199   :  { %v294_v59 = vshll.u32 %v254_v54, 8  ;;  %vm199_vm13 = vc.u32 %v602_v39, %v608_v43  ;;  %v268_v61 = vor.u32 %v267_v48, %v266_v46  ;;  %vm280_vm14 = vcmp.lt.s32.totalorder %v587_v51, 3 }
 0x19a   :  { %v271_v62 = vor.u32 %v270_v53, %v269_v50  ;;  %v200_v49 = vadd.s32 1, %v609_v44  ;;  %vm278_vm15 = vcmp.lt.s32.totalorder %v587_v51, 1  ;;  %vm279_vm1 = vcmp.lt.s32.totalorder %v587_v51, 2 }
 0x19b   :  { %v292_v55 = vsel %vm280_vm14, %v274_v17, %v291_v42  ;;  %v286_v52 = vsel %vm278_vm15, %v265_v47, %v268_v61  ;;  %v282_v0 = vsel %vm278_vm15, %v262_v58, %v265_v47  ;;  %v198_v28 = vadd.s32 %v608_v43, %v602_v39 }
 0x19c   :  { %v283_v60 = vsel %vm281_vm8, %v271_v62, 2102212464  ;;  %v288_v63 = vsel %vm280_vm14, %v271_v62, %v287_v56  ;;  %v290_v45 = vsel %vm278_vm15, %v268_v61, %v271_v62  ;;  %v201_v54 = vsel %vm199_vm13, %v200_v49, %v609_v44 }
 0x19d   :  { %v289_v1 = vsel %vm279_vm1, %v286_v52, %v288_v63  ;;  %v293_v2 = vsel %vm279_vm1, %v290_v45, %v292_v55  ;;  %v202_v3 = vadd.s32 %v201_v54, %v197_v57  ;;  %v284_v4 = vsel %vm280_vm14, %v268_v61, %v283_v60 }
 0x19e   :  { %v631_v6 = vmul.u32.u64.low %v294_v59, %v293_v2  ;;  %v632_v7 = vmul.u32.u64.high %v294_v59, %v293_v2, %v631_v6  ;;  %v634_v8 = vmul.u32.u64.low %v294_v59, %v289_v1  ;;  %v635_v9 = vmul.u32.u64.high %v294_v59, %v289_v1, %v634_v8 }
 0x19f   :  { %v203_v10 = vadd.s32 536870912, %v202_v3  ;;  %v285_v11 = vsel %vm279_vm1, %v282_v0, %v284_v4  ;;  %vm234_vm11 = vweird.f32 %v575_v33  ;;  %vm366_vm12 = vcmask 261120  }
 0x1a0   :  { %vm303_vm2 = vc.u32 %v632_v7, %v634_v8  ;;  %v304_v13 = vadd.s32 1, %v635_v9  ;;  %v301_v15 = vmul.u32 %v294_v59, %v285_v11  ;;  %v302_v39 = vadd.s32 %v634_v8, %v632_v7 }
 0x1a1   :  { %v204_v12 = vshrl.u32 %v203_v10, 30  ;;  %vm338_vm1 = vweird.f32 %v573_v32 }
 0x1a2   :  { %v305_v16 = vsel %vm303_vm2, %v304_v13, %v635_v9 }
 0x1a3   :  { %v205_v14 = vshll.u32 %v204_v12, 30  ;;  %v306_v18 = vadd.s32 %v305_v16, %v301_v15  ;;  %v228_v59 = vsub.s32 4, %v204_v12 }
 0x1a5   :  { %v206_v17 = vsub.s32 %v202_v3, %v205_v14  ;;  %v307_v20 = vadd.s32 536870912, %v306_v18  ;;  %v229_v63 = vsel %vm144_vm5, %v228_v59, %v204_v12 }
 0x1a6   :  { %v231_v0 = vsel %vm143_vm6, 0, %v229_v63 }
 0x1a7   :  { %v208_v19 = vsub.s32 0, %v206_v17  ;;  %v308_v22 = vshrl.u32 %v307_v20, 30  ;;  %v235_v6 = vadd.s32 3, %v231_v0  ;;  %v356_v20 = vpop.permute.xlu0 %355 }
 0x1a9   :  { %v390_v21 = vmin.u32 %v208_v19, %v206_v17  ;;  %v309_v24 = vshll.u32 %v308_v22, 30  ;;  %v332_v4 = vsub.s32 4, %v308_v22  ;;  %v236_v9 = vand.u32 3, %v235_v6 }
 0x1ab   :  { %v210_v23 = vclz %v390_v21  ;;  %v310_v51 = vsub.s32 %v306_v18, %v309_v24  ;;  %vm241_vm8 = vcmp.eq.s32.totalorder %v236_v9, 2  ;;  %vm238_vm9 = vcmp.eq.s32.totalorder %v236_v9, 0 }
 0x1ac   :  { %vm237_vm10 = vcmp.lt.s32.totalorder %v236_v9, 2 }
 0x1ad   :  { %v391_v25 = vadd.s32 4294967294, %v210_v23  ;;  %v312_v27 = vsub.s32 0, %v310_v51 }
 0x1af   :  { %vm392_vm3 = vcmp.lt.s32.totalorder %v391_v25, 0  ;;  %v394_v31 = vmin.u32 %v312_v27, %v310_v51 }
 0x1b0   :  { %v213_v26 = vsel %vm392_vm3, 0, %v391_v25 }
 0x1b1   :  { %v214_v29 = vsub.s32 32, %v213_v26  ;;  %v218_v30 = vsub.s32 4294967266, %v213_v26  ;;  %v215_v34 = vshll.u32 %v206_v17, %v213_v26  ;;  %v314_v38 = vclz %v394_v31 }
 0x1b3   :  { %v216_v35 = vshrl.u32 %v198_v28, %v214_v29  ;;  %v219_v37 = vadd.s32 127, %v218_v30  ;;  %v395_v44 = vadd.s32 4294967294, %v314_v38  ;;  %v363_v28 = vpop.permute.xlu0 %362 }
 0x1b5   :  { %v217_v40 = vor.u32 %v216_v35, %v215_v34  ;;  %v220_v42 = vshll.u32 %v219_v37, 23  ;;  %vm396_vm4 = vcmp.lt.s32.totalorder %v395_v44, 0 }
 0x1b6   :  { %v317_v53 = vsel %vm396_vm4, 0, %v395_v44 }
 0x1b7   :  { %v221_v46 = vor.u32 4788187, %v220_v42  ;;  %v224_v50 = vcvt.s32.f32 %v217_v40  ;;  %v318_v43 = vsub.s32 32, %v317_v53  ;;  %v322_v57 = vsub.s32 4294967266, %v317_v53 }
 0x1b8   :  { %v319_v61 = vshll.u32 %v310_v51, %v317_v53 }
 0x1b9   :  { %v109_v47 = vpop.xlane.xlu1 %108  ;;  %v222_v48 = vand.u32 2147483647, %v221_v46  ;;  %v320_v62 = vshrl.u32 %v302_v39, %v318_v43  ;;  %v323_v49 = vadd.s32 127, %v322_v57 }
 0x1ba   :  { %v110_v56 = vadd.f32 %v109_v47, %v567_v5 }
 0x1bb   :  { %v225_v58 = vmul.f32 %v224_v50, %v222_v48  ;;  %v321_v60 = vor.u32 %v320_v62, %v319_v61  ;;  %v324_v52 = vshll.u32 %v323_v49, 23 }
 0x1bc   :  { %112 = vst.msk [vmem:[#allocation2] sm:$0x3] %vm44_vm0, %v110_v56  ;;  %vm248_vm0 = vcmp.lt.s32.totalorder %v573_v32, 0 }
 0x1bd   :  { %v226_v55 = vxor.u32 2147483648, %v225_v58  ;;  %v325_v54 = vor.u32 4788187, %v324_v52  ;;  %v328_v2 = vcvt.s32.f32 %v321_v60  ;;  %v333_v8 = vsel %vm248_vm0, %v332_v4, %v308_v22 }
 0x1be   :  { %v335_v12 = vsel %vm247_vm7, 0, %v333_v8 }
 0x1bf   :  { %v227_v5 = vsel %vm144_vm5, %v226_v55, %v225_v58  ;;  %v326_v1 = vand.u32 2147483647, %v325_v54  ;;  %v339_v17 = vadd.s32 3, %v335_v12 }
 0x1c0   :  { %v230_v45 = vsel %vm143_vm6, %v575_v33, %v227_v5 }
 0x1c1   :  { %428 = vcosq.f32 %v230_v45  ;;  %v329_v3 = vmul.f32 %v328_v2, %v326_v1  ;;  %v340_v22 = vand.u32 3, %v339_v17 }
 0x1c2   :  { %430 = vsinq.f32 %v230_v45 }
 0x1c3   :  { %v330_v7 = vxor.u32 2147483648, %v329_v3  ;;  %vm345_vm13 = vcmp.eq.s32.totalorder %v340_v22, 2  ;;  %vm342_vm14 = vcmp.eq.s32.totalorder %v340_v22, 0  ;;  %vm341_vm15 = vcmp.lt.s32.totalorder %v340_v22, 2 }
 0x1c5   :  { %v331_v36 = vsel %vm248_vm0, %v330_v7, %v329_v3 }
 0x1c6   :  { %v334_v10 = vsel %vm247_vm7, %v573_v32, %v331_v36 }
 0x1c7   :  { %432 = vcosq.f32 %v334_v10 }
 0x1c8   :  { %434 = vsinq.f32 %v334_v10 }
 0x1cb   :  { %v429_v11 = vpop.eup %428 }
 0x1cc   :  { %v431_v13 = vpop.eup %430  ;;  %v242_v14 = vxor.u32 2147483648, %v429_v11 }
 0x1cd   :  { %v239_v15 = vxor.u32 2147483648, %v431_v13 }
 0x1ce   :  { %v243_v16 = vsel %vm241_vm8, %v242_v14, %v431_v13 }
 0x1cf   :  { %v240_v18 = vsel %vm238_vm9, %v429_v11, %v239_v15 }
 0x1d0   :  { %v244_v41 = vsel %vm237_vm10, %v240_v18, %v243_v16 }
 0x1d1   :  { %v245_v19 = vsel %vm234_vm11, nan, %v244_v41  ;;  %v433_v23 = vpop.eup %432 }
 0x1d2   :  { %v364_v21 = vmul.f32 %v356_v20, %v245_v19  ;;  %v435_v24 = vpop.eup %434  ;;  %v346_v25 = vxor.u32 2147483648, %v433_v23 }
 0x1d3   :  { %v343_v51 = vxor.u32 2147483648, %v435_v24 }
 0x1d4   :  { %367 = vst.msk [vmem:[#allocation8] sm:$0xff] %vm366_vm12, %v364_v21  ;;  %v347_v26 = vsel %vm345_vm13, %v346_v25, %v435_v24 }
 0x1d5   :  { %v344_v27 = vsel %vm342_vm14, %v433_v23, %v343_v51 }
 0x1d6   :  { %v348_v33 = vsel %vm341_vm15, %v344_v27, %v347_v26 }
 0x1d7   :  { %v349_v29 = vsel %vm338_vm1, nan, %v348_v33 }
 0x1d8   :  { %v365_v30 = vmul.f32 %v363_v28, %v349_v29 }
 0x1da   :  { %368 = vst.msk [vmem:[#allocation8 + $0x8] sm:$0xff] %vm366_vm12, %v365_v30 }
 0x1db   :  { %491 = shalt.err (!%p488_p6)
}
 0x1dc   :  { %s492_s13 = scalar_lea.hbm %s673_s3, 256 }
 0x1dd   :  { %p493_p7 = scmp.ne.s32.totalorder %s673_s3, %s492_s13  ;;  %p496_p8 = scmp.lt.u32.totalorder %s492_s13, %s673_s3 }
 0x1df   :  { %p498_p9 = pnand %p496_p8, %p493_p7 }
 0x1e1   :  { %501 = shalt.err (!%p498_p9)
}
 0x1e2   :  { %s520_s18 = smov 128   ;;  %s521_s19 = smov 8  }
 0x1e3   :  { %380 = dma.vmem_to_hbm [thread:$0]  %s375_s9, 256, %s673_s3, [#allocation5], %s520_s18, %s520_s18, %s521_s19  }
 0x1e4   :  { %506 = dma.done.wait [#allocation5], 256  }
 0x1e5   :  { %507 = vsyncadd [#allocation5], 4294967040 }
 0x1e6   :  { %384 = vsyncpa [#allocation4], 1 }
 0x1e7   :  { %385 = vsyncpa [#allocation7], 1 }
 0x1e8   :  { %386 = vsyncpa [#allocation5], 1 }

</bundles_post_ra>
